<compile_context>
chip_gen: v6e
topology: v6e:2x2x1
jax: 0.10.0
libtpu: 0.0.40
codegen_flags: <defaults>
</compile_context>

<pallas_src>
import jax
import jax.numpy as jnp
from jax import lax
from jax.experimental import pallas as pl
from jax.experimental.pallas import tpu as pltpu


def _style_loss_kernel(tgt_ref, inp_ref, out_ref, g_diff_ref):
    # tgt_ref / inp_ref: (1, ch, TK) VMEM tiles for (batch b, k-th hw chunk)
    # out_ref:           (1, 8, 128) per-batch partial-sum tile (lane dense)
    # g_diff_ref:        (ch, ch) f32 accumulator of (G_inp - G_tgt), VMEM scratch
    k = pl.program_id(1)

    @pl.when(k == 0)
    def _():
        g_diff_ref[...] = jnp.zeros_like(g_diff_ref)

    f_t = tgt_ref[0]  # (ch, TK)
    f_i = inp_ref[0]  # (ch, TK)

    # f @ f.T expressed as a contraction on the last axis of both operands:
    # no explicit transpose is materialized; MXU consumes the natural layout.
    dims = (((1,), (1,)), ((), ()))
    g_i = lax.dot_general(f_i, f_i, dims, preferred_element_type=jnp.float32)
    g_t = lax.dot_general(f_t, f_t, dims, preferred_element_type=jnp.float32)
    g_diff_ref[...] += g_i - g_t

    @pl.when(k == pl.num_programs(1) - 1)
    def _():
        # Unnormalized per-batch L1 partial sum; all scaling is folded into
        # the final scalar divide in the JAX wrapper.
        s = jnp.sum(jnp.abs(g_diff_ref[...]))
        out_ref[...] = jnp.full(out_ref.shape, s, dtype=out_ref.dtype)


def _choose_tk(hw: int, ch: int, itemsize: int,
               budget_bytes: int = 8 * 1024 * 1024) -> int:
    """Pick an hw tile width: a multiple of 128 that divides hw, such that
    2 inputs x 2 pipeline buffers x ch x TK x itemsize <= budget (conservative
    for v5e's 16 MiB default scoped VMEM; trivially safe on v6e/v7x)."""
    if hw % 128 != 0:
        # Full-extent block is always legal under the (8,128) tiling rule.
        return hw
    cap = max(128, (budget_bytes // (4 * ch * itemsize)) // 128 * 128)
    best = 128
    t = 128
    limit = min(hw, cap)
    while t <= limit:
        if hw % t == 0:
            best = t
        t += 128
    return best


def style_loss(target_feature: jax.Array, inputs: jax.Array) -> jax.Array:
    """Pallas equivalent of StyleLoss.forward(target_feature, inputs)."""
    assert target_feature.shape == inputs.shape
    bs, ch, h, w = inputs.shape
    hw = h * w

    # Glue in plain JAX: flatten spatial dims (== x.view(bs, ch, h*w)).
    # Native dtype is kept; accumulation inside the kernel is f32.
    f_t = target_feature.reshape(bs, ch, hw)
    f_i = inputs.reshape(bs, ch, hw)

    tk = _choose_tk(hw, ch, jnp.dtype(f_i.dtype).itemsize)
    nk = hw // tk

    partial = pl.pallas_call(
        _style_loss_kernel,
        out_shape=jax.ShapeDtypeStruct((bs, 8, 128), jnp.float32),
        grid_spec=pltpu.PrefetchScalarGridSpec(
            num_scalar_prefetch=0,
            grid=(bs, nk),
            in_specs=[
                pl.BlockSpec((1, ch, tk), lambda b, k: (b, 0, k)),
                pl.BlockSpec((1, ch, tk), lambda b, k: (b, 0, k)),
            ],
            out_specs=pl.BlockSpec((1, 8, 128), lambda b, k: (b, 0, 0)),
            scratch_shapes=[
                pltpu.VMEM((ch, ch), jnp.float32),  # (G_inp - G_tgt) accumulator
            ],
        ),
        compiler_params=pltpu.CompilerParams(
            # Batch axis can be sharded across TensorCores (megacore);
            # the hw axis is the sequential contraction (last in the grid).
            dimension_semantics=("parallel", "arbitrary"),
        ),
    )(f_t, f_i)

    # Fold the per-gram 1/(ch*h*w) and the L1 'mean' 1/(bs*ch*ch) into a
    # single scalar divide (linear, hence exactly equivalent).
    denom = float(bs) * ch * ch * ch * h * w
    return jnp.sum(partial[:, 0, 0]) / jnp.float32(denom)


def _style_loss_reference(target_feature, inputs):
    bs, ch, h, w = inputs.shape
    f_i = inputs.reshape(bs, ch, h * w).astype(jnp.float32)
    f_t = target_feature.reshape(bs, ch, h * w).astype(jnp.float32)
    g_i = jnp.einsum("bck,bdk->bcd", f_i, f_i) / (ch * h * w)
    g_t = jnp.einsum("bck,bdk->bcd", f_t, f_t) / (ch * h * w)
    return jnp.mean(jnp.abs(g_i - g_t))


if __name__ == "__main__":
    key = jax.random.PRNGKey(0)
    k1, k2 = jax.random.split(key)
    # Small shapes consistent with a conv feature map: (bs, ch, h, w)
    target_feature = jax.random.normal(k1, (2, 4, 16, 16), dtype=jnp.float32)
    inputs = jax.random.normal(k2, (2, 4, 16, 16), dtype=jnp.float32)

    loss = style_loss(target_feature, inputs)
    jax.block_until_ready(loss)

    ref = _style_loss_reference(target_feature, inputs)
    assert jnp.allclose(loss, ref, rtol=1e-5, atol=1e-5), (loss, ref)

    print("KERNEL_OK")
</pallas_src>

<mosaic_0001>
module attributes {stable_mosaic.version = 11 : i64} {
  func.func @_style_loss_kernel(%arg0: i32, %arg1: i32, %arg2: memref<1x4x256xf32, #tpu.memory_space<vmem>>, %arg3: memref<1x4x256xf32, #tpu.memory_space<vmem>>, %arg4: memref<1x8x128xf32, #tpu.memory_space<vmem>>, %arg5: memref<4x4xf32, #tpu.memory_space<vmem>>) attributes {dimension_semantics = [#tpu.dimension_semantics<parallel>, #tpu.dimension_semantics<arbitrary>], iteration_bounds = array<i64: 2, 1>, scalar_prefetch = 0 : i64, scratch_operands = 1 : i64, tpu.core_type = #tpu.core_type<tc>, window_params = [{transform_indices = @transform_0, window_bounds = array<i64: 1, 4, 256>}, {transform_indices = @transform_1, window_bounds = array<i64: 1, 4, 256>}, {transform_indices = @transform_2, window_bounds = array<i64: 1, 8, 128>}]} {
    %c0_i32 = arith.constant 0 : i32
    %0 = arith.cmpi eq, %arg1, %c0_i32 : i32
    %1 = arith.extui %0 : i1 to i32
    %c0_i32_0 = arith.constant 0 : i32
    %2 = arith.cmpi ne, %1, %c0_i32_0 : i32
    scf.if %2 {
      %cst_13 = arith.constant 0.000000e+00 : f32
      %16 = vector.broadcast %cst_13 : f32 to vector<4x4xf32>
      %c0_14 = arith.constant 0 : index
      %c0_15 = arith.constant 0 : index
      %17 = vector.load %arg5[%c0_14, %c0_15] : memref<4x4xf32, #tpu.memory_space<vmem>>, vector<4x4xf32>
      tpu.vector_store %arg5[%c0_14, %c0_15], %16 {strides = array<i32>} : memref<4x4xf32, #tpu.memory_space<vmem>>, vector<4x4xf32>,
    } else {
    }
    %c0 = arith.constant 0 : index
    %c0_1 = arith.constant 0 : index
    %c0_2 = arith.constant 0 : index
    %3 = vector.load %arg2[%c0, %c0_1, %c0_2] : memref<1x4x256xf32, #tpu.memory_space<vmem>>, vector<1x4x256xf32>
    %4 = vector.shape_cast %3 : vector<1x4x256xf32> to vector<4x256xf32>
    %c0_3 = arith.constant 0 : index
    %c0_4 = arith.constant 0 : index
    %c0_5 = arith.constant 0 : index
    %5 = vector.load %arg3[%c0_3, %c0_4, %c0_5] : memref<1x4x256xf32, #tpu.memory_space<vmem>>, vector<1x4x256xf32>
    %6 = vector.shape_cast %5 : vector<1x4x256xf32> to vector<4x256xf32>
    %cst = arith.constant dense<0.000000e+00> : vector<4x4xf32>
    %7 = tpu.matmul %6, %6, %cst {dimension_numbers = #tpu.dot_dimension_numbers<[1], [1], [0], [0], [0, 0, 1, 0], [], []>} : vector<4x256xf32>, vector<4x256xf32>, vector<4x4xf32> -> vector<4x4xf32>
    %cst_6 = arith.constant dense<0.000000e+00> : vector<4x4xf32>
    %8 = tpu.matmul %4, %4, %cst_6 {dimension_numbers = #tpu.dot_dimension_numbers<[1], [1], [0], [0], [0, 0, 1, 0], [], []>} : vector<4x256xf32>, vector<4x256xf32>, vector<4x4xf32> -> vector<4x4xf32>
    %c0_7 = arith.constant 0 : index
    %c0_8 = arith.constant 0 : index
    %9 = vector.load %arg5[%c0_7, %c0_8] : memref<4x4xf32, #tpu.memory_space<vmem>>, vector<4x4xf32>
    %10 = arith.subf %7, %8 : vector<4x4xf32>
    %11 = arith.addf %9, %10 : vector<4x4xf32>
    %c0_9 = arith.constant 0 : index
    %c0_10 = arith.constant 0 : index
    %12 = vector.load %arg5[%c0_9, %c0_10] : memref<4x4xf32, #tpu.memory_space<vmem>>, vector<4x4xf32>
    tpu.vector_store %arg5[%c0_9, %c0_10], %11 {strides = array<i32>} : memref<4x4xf32, #tpu.memory_space<vmem>>, vector<4x4xf32>,
    %c0_i32_11 = arith.constant 0 : i32
    %13 = arith.cmpi eq, %arg1, %c0_i32_11 : i32
    %14 = arith.extui %13 : i1 to i32
    %c0_i32_12 = arith.constant 0 : i32
    %15 = arith.cmpi ne, %14, %c0_i32_12 : i32
    scf.if %15 {
      %c0_13 = arith.constant 0 : index
      %c0_14 = arith.constant 0 : index
      %16 = vector.load %arg5[%c0_13, %c0_14] : memref<4x4xf32, #tpu.memory_space<vmem>>, vector<4x4xf32>
      %17 = math.absf %16 : vector<4x4xf32>
      %18 = vector.shape_cast %17 : vector<4x4xf32> to vector<1x4x4xf32>
      %cst_15 = arith.constant dense<0.000000e+00> : vector<1xf32>
      %19 = vector.multi_reduction <add>, %18, %cst_15 [1, 2] : vector<1x4x4xf32> to vector<1xf32>
      %20 = vector.shape_cast %19 : vector<1xf32> to vector<1x1x1xf32>
      %21 = vector.extract %20[0, 0, 0] : f32 from vector<1x1x1xf32>
      %22 = vector.broadcast %21 : f32 to vector<1x8x128xf32>
      %c0_16 = arith.constant 0 : index
      %c0_17 = arith.constant 0 : index
      %c0_18 = arith.constant 0 : index
      %23 = vector.load %arg4[%c0_16, %c0_17, %c0_18] : memref<1x8x128xf32, #tpu.memory_space<vmem>>, vector<1x8x128xf32>
      tpu.vector_store %arg4[%c0_16, %c0_17, %c0_18], %22 {strides = array<i32>} : memref<1x8x128xf32, #tpu.memory_space<vmem>>, vector<1x8x128xf32>,
    } else {
    }
    return
  }
  func.func @transform_0(%arg0: i32, %arg1: i32) -> (i32, i32, i32) {
    %c0_i32 = arith.constant 0 : i32
    %c0_i32_0 = arith.constant 0 : i32
    return %arg0, %c0_i32, %arg1 : i32, i32, i32
  }
  func.func @transform_1(%arg0: i32, %arg1: i32) -> (i32, i32, i32) {
    %c0_i32 = arith.constant 0 : i32
    %c0_i32_0 = arith.constant 0 : i32
    return %arg0, %c0_i32, %arg1 : i32, i32, i32
  }
  func.func @transform_2(%arg0: i32, %arg1: i32) -> (i32, i32, i32) {
    %c0_i32 = arith.constant 0 : i32
    %c0_i32_0 = arith.constant 0 : i32
    %c0_i32_1 = arith.constant 0 : i32
    return %arg0, %c0_i32, %c0_i32_0 : i32, i32, i32
  }
}

</mosaic_0001>

<bundles_post_ra>
// kernel: tpu_custom_call.1
= control target key start
LH: loop header
LB: loop body
LE: loop exit
PB: predicated region body
PF: predicated region fallthrough
CT: control target
= control target key end

     0   :  { %7 = vsyncpa [#allocation4], 0  ;;  %s942_s0 = inlined_call_operand.hbm [shape: f32[2,4,256], index: 0, kind: input, shape index: {}]   ;;  %s943_s1 = inlined_call_operand.hbm [shape: f32[2,4,256], index: 1, kind: input, shape index: {}]   ;;  %s944_s2 = inlined_call_operand.hbm [shape: f32[2,8,128], index: 2, kind: output, shape index: {}]  }
   0x1   :  { %9 = vsyncpa [#allocation4 + $0x1], 0 }
   0x2   :  { %10 = vsyncpa [#allocation7], 0 }
   0x3   :  { %12 = vsyncpa [#allocation7 + $0x1], 0 }
   0x4   :  { %13 = vsyncpa [#allocation5], 0 }
   0x5   :  { %15 = vsyncpa [#allocation5 + $0x1], 0  ;;  %s770_s9 = smov 0   ;;  %s772_s10 = smov 0  }
   0x6   :  { %s774_s11 = smov 0   ;;  %s776_s12 = smov 0  }
   0x7   :  { %s778_s13 = smov 0   ;;  %s780_s14 = smov 0  }
   0x8 LB: > { %s517_s15 = sadd.s32 4294967295, %s749_s14   ;;  %s518_s16 = sadd.s32 4294967294, %s749_s14   ;;  %s749_s14 = sphi %s780_s14, %s21_s14   ;;  %s745_s13 = sphi %s778_s13, %s956_s13   ;;  %s741_s12 = sphi %s776_s12, %s955_s12   ;;  %s737_s11 = sphi %s774_s11, %s954_s11   ;;  %s733_s10 = sphi %s772_s10, %s953_s10   ;;  %s729_s9 = sphi %s770_s9, %s952_s9  }
   0x9   : > { %s33_s17 = sadd.s32 1, %s745_s13  ;;  %s42_s18 = sadd.s32 1, %s737_s11 }
   0xa   : > { %p35_p0 = scmp.ge.s32.totalorder %s33_s17, 2  ;;  %p49_p1 = scmp.ne.s32.totalorder %s737_s11, %s733_s10 }
   0xb   : > { %p50_p2 = scmp.eq.s32.totalorder %s749_s14, 0  ;;  %p55_p3 = scmp.ne.s32.totalorder %s733_s10, %s729_s9 }
   0xc   : > { %s958_s17 = smov (%p35_p0, %s33_s17), 0  ;;  %p56_p5 = scmp.eq.s32.totalorder %s517_s15, 0 }
   0xd   : > { %p811_p4 = por %p50_p2, %p49_p1  ;;  %s37_s20 = ssub.s32 %s745_s13, %s958_s17 }
   0xe   : > { %p107_p6 = scmp.eq.s32.totalorder %s517_s15, 1  ;;  %p40_p7 = scmp.eq.s32.totalorder %s37_s20, 0 }
   0xf   : > { %p817_p8 = por %p56_p5, %p55_p3  ;;  %p113_p10 = scmp.eq.s32.totalorder %s518_s16, 1 }
  0x10   : > { %p821_p9 = por %p107_p6, %p49_p1  ;;  %p556_p13 = scmp.lt.s32.totalorder %s749_s14, 2 }
  0x11   : > { %s826_s23 = scalar_select %p40_p7, %s737_s11, %s42_s18  }
  0x12   : > { %p828_p11 = por %p113_p10, %p55_p3  ;;  %s835_s25 = sand.u32 1, %s737_s11  }
  0x13   : > { %s521_s26 = sshll.u32 %s835_s25, 3  ;;  %s535_s27 = sshll.u32 %s745_s13, 7 }
  0x14   : > { %s145_s30 = scalar_lea.hbm %s942_s0, %s535_s27  ;;  %s137_s3 = scalar_lea.vmem [#allocation3], %s521_s26 }
  0x15   : > { %s147_s4 = sshll.u32 %s137_s3, 4  ;;  %p844_p0 = pnand %p556_p13, %p811_p4  ;;  %s148_s4 = int_to_ptr.vmem [resolvable:$true] %s147_s4 }
  0x16   : > { %p527_p1 = scmp.ge.s32.totalorder %s749_s14, 1  ;;  %p173_p2 = scmp.lt.s32.totalorder %s749_s14, 3 }
  0x17   : > { %s134_s6 = scalar_lea.sflag [#allocation4], %s835_s25  ;;  %p611_p3 = pneg %p844_p0 }
  0x18   : > { %s622_s7 = scalar_lea.vmem %s148_s4, 128  ;;  %s751_s8 = smov [#allocation3]  }
  0x19   : > { %p623_p5 = scmp.ne.s32.totalorder %s148_s4, %s622_s7  ;;  %s627_s15 = sshll.u32 %s751_s8, 4  ;;  %s628_s15 = int_to_ptr.vmem [resolvable:$false] %s627_s15 }
  0x1a   : > { %s629_s16 = scalar_lea.vmem %s628_s15, 256  ;;  %p630_p4 = scmp.lt.s32.totalorder %s148_s4, %s628_s15 }
  0x1b   : > { %p625_p6 = pnand %p623_p5, %p611_p3  ;;  %p631_p10 = scmp.lt.s32.totalorder %s629_s16, %s622_s7 }
  0x1d   : > { %p626_p7 = pneg %p625_p6  ;;  %p632_p13 = por %p631_p10, %p630_p4 }
  0x1f   : > { %p633_p12 = pnand %p632_p13, %p626_p7 }
  0x21   : > { %636 = shalt.err (!%p633_p12)
}
  0x22   : > { %548 = dma.hbm_to_vmem [thread:$0]  (!%p844_p0), %s145_s30, 128, %s148_s4, %s134_s6  }
  0x23   : > { %p862_p5 = pnand %p527_p1, %p173_p2  ;;  %s166_s28 = scalar_lea.hbm %s943_s1, %s535_s27 }
  0x24   : > { %s158_s29 = scalar_lea.vmem [#allocation6], %s521_s26  ;;  %s155_s7 = scalar_lea.sflag [#allocation7], %s835_s25 }
  0x25   : > { %s168_s3 = sshll.u32 %s158_s29, 4  ;;  %s752_s30 = smov [#allocation6]   ;;  %s169_s3 = int_to_ptr.vmem [resolvable:$true] %s168_s3 }
  0x26   : > { %s650_s8 = scalar_lea.vmem %s169_s3, 128  ;;  %s655_s4 = sshll.u32 %s752_s30, 4  ;;  %s656_s4 = int_to_ptr.vmem [resolvable:$false] %s655_s4 }
  0x27   : > { %p651_p12 = scmp.ne.s32.totalorder %s169_s3, %s650_s8  ;;  %s657_s6 = scalar_lea.vmem %s656_s4, 256 }
  0x28   : > { %p658_p1 = scmp.lt.s32.totalorder %s169_s3, %s656_s4  ;;  %p659_p2 = scmp.lt.s32.totalorder %s657_s6, %s650_s8 }
  0x29   : > { %p653_p6 = pnand %p651_p12, %p611_p3 }
  0x2a   : > { %p660_p4 = por %p659_p2, %p658_p1 }
  0x2b   : > { %p654_p7 = pneg %p653_p6 }
  0x2d   : > { %p661_p10 = pnand %p660_p4, %p654_p7 }
  0x2f   : > { %664 = shalt.err (!%p661_p10)
}
  0x30   : > { %551 = dma.hbm_to_vmem [thread:$0]  (!%p844_p0), %s166_s28, 128, %s169_s3, %s155_s7  }
  0x31   : > { %177 = sbr.rel (%p862_p5) target bundleno = 486 (0x1e6), region = 28  ;;  %s878_s25 = sand.u32 (!%p862_p5), 1, %s733_s10  }
  0x32   : > { %s881_s26 = sshll.u32 (!%p862_p5), %s878_s25, 3  ;;  %s180_s27 = scalar_lea.sflag (!%p862_p5), [#allocation4], %s878_s25 }
  0x33   : > { %s183_s15 = scalar_lea.vmem (!%p862_p5), [#allocation3], %s881_s26 }
  0x36   : > { %716 = dma.done.wait (%p817_p8), %s180_s27, 128  }
  0x37   : > { %718 = vsyncadd (%p817_p8), %s180_s27, 4294967168  ;;  %s189_s5 = scalar_lea.sflag [#allocation7], %s878_s25  ;;  %s192_s16 = scalar_lea.vmem [#allocation6], %s881_s26 }
  0x38   : > { %720 = dma.done.wait (%p817_p8), %s189_s5, 128  }
  0x39   : > { %722 = vsyncadd (%p817_p8), %s189_s5, 4294967168  ;;  %v227_v0 = vld [vmem:[%s192_s16] sm:$0xff]  ;;  %v226_v1 = vld [vmem:[%s183_s15] sm:$0xff]  ;;  %vm224_vm0 = vcmask 27648   ;;  %v753_v4 = vmov 0.0   ;;  %s217_s21 = scalar_lea.vmem [#allocation8], %s881_s26 }
  0x3a   : > { %v229_v2 = vcombine.high %v227_v0, %v227_v0  ;;  %v302_v3 = vcombine.high %v226_v1, %v226_v1  ;;  %225 = vst.msk [vmem:[#allocation2] sm:$0xf] %vm224_vm0, %v753_v4  ;;  %s410_s18 = sshll.u32 %s217_s21, 4  ;;  %s532_s19 = sshll.u32 %s741_s12, 7  ;;  %s897_s18 = int_to_ptr.vmem [resolvable:$true] %s410_s18 }
  0x3b   : > { %s408_s3 = scalar_lea.hbm %s944_s2, %s532_s19  ;;  %s397_s7 = scalar_lea.sflag [#allocation5], %s878_s25 }
  0x3c   : > { %261 = vmatprep.subr.mxu0 %v229_v2  ;;  %334 = vmatprep.subr.mxu1 %v302_v3  ;;  %s665_s8 = scalar_lea.vmem %s897_s18, 128  ;;  %s754_s30 = smov [#allocation8]  }
  0x3d   : > { %262 = vmatpush1.xpose.msra.mxu0 %v227_v0  ;;  %335 = vmatpush1.xpose.msra.mxu1 %v226_v1  ;;  %p666_p8 = scmp.ne.s32.totalorder %s897_s18, %s665_s8  ;;  %s669_s12 = sshll.u32 %s754_s30, 4  ;;  %s670_s12 = int_to_ptr.vmem [resolvable:$false] %s669_s12 }
  0x3e   : > { %295 = vmatprep.mubr.f32.mxu0 %v229_v2  ;;  %368 = vmatprep.mubr.f32.mxu1 %v302_v3  ;;  %s671_s4 = scalar_lea.vmem %s670_s12, 256  ;;  %p672_p13 = scmp.lt.s32.totalorder %s897_s18, %s670_s12 }
  0x3f   : > { %p667_p0 = pnand %p666_p8, %p821_p9  ;;  %p673_p5 = scmp.lt.s32.totalorder %s671_s4, %s665_s8 }
  0x40   : > { %296 = vmatmul.mubr.f32.vlgmr.msra.gmra.mxu0 %v227_v0  ;;  %369 = vmatmul.mubr.f32.vlgmr.msra.gmra.mxu1 %v226_v1 }
  0x41   : > { %v374_v7 = vld [vmem:[#allocation2] sm:$0xf]  ;;  %p668_p3 = pneg %p667_p0  ;;  %p674_p12 = por %p673_p5, %p672_p13 }
  0x43   : > { %p675_p6 = pnand %p674_p12, %p668_p3 }
 0x100   : > { %v297_v5 = vpop.f32.mrf.mxu0  ;;  %v370_v6 = vpop.f32.mrf.mxu1 }
 0x101   : > { %v375_v8 = vsub.f32 %v297_v5, %v370_v6 }
 0x102   : > { %v299_v9 = vpop.f32.mrf.mxu0  ;;  %v372_v10 = vpop.f32.mrf.mxu1 }
 0x103   : > { %v376_v11 = vadd.f32 %v375_v8, %v374_v7 }
 0x105   : > { %378 = vst.msk [vmem:[#allocation2] sm:$0xf] %vm224_vm0, %v376_v11 }
 0x10c   : > { %v382_v12 = vld [vmem:[#allocation2] sm:$0xf] }
 0x10d   : > { %v383_v13 = vand.u32 2147483647, %v382_v12 }
 0x10f   : > { %v384_v14 = vsel %vm224_vm0, %v383_v13, 0.0 }
 0x110   : > { %385 = vadd.xlane.f32.xlu0 %v384_v14 }
 0x199   : > { %v386_v15 = vpop.xlane.xlu0 %385 }
 0x19a   : > { %v387_v16 = vrot.slane %v386_v15, 4 }
 0x19c   : > { %v388_v17 = vadd.f32 %v387_v16, %v386_v15 }
 0x19e   : > { %v389_v18 = vrot.slane %v388_v17, 2 }
 0x1a0   : > { %v390_v19 = vadd.f32 %v389_v18, %v388_v17 }
 0x1a2   : > { %v391_v20 = vrot.slane %v390_v19, 1 }
 0x1a4   : > { %v392_v21 = vadd.f32 %v391_v20, %v390_v19 }
 0x1a6   : > { %537 = vpush %v392_v21 }
 0x1d7   : > { %s538_s20 = spop %537 }
 0x1d8   : > { %v394_v22 = vstv %s538_s20 }
 0x1d9   : > { %395 = vst [vmem:[%s217_s21] sm:$0xff] %v394_v22 }
 0x1da   : > { %678 = shalt.err (!%p675_p6)
}
 0x1db   : > { %s679_s6 = scalar_lea.hbm %s408_s3, 128  ;;  %s683_s27 = scalar_lea.hbm %s944_s2, 256 }
 0x1dc   : > { %p680_p7 = scmp.ne.s32.totalorder %s408_s3, %s679_s6  ;;  %p684_p4 = scmp.lt.s32.totalorder %s408_s3, %s944_s2 }
 0x1dd   : > { %p685_p10 = scmp.lt.s32.totalorder %s683_s27, %s679_s6 }
 0x1de   : > { %p681_p1 = pnand %p680_p7, %p821_p9 }
 0x1df   : > { %p686_p8 = por %p685_p10, %p684_p4 }
 0x1e0   : > { %p682_p2 = pneg %p681_p1 }
 0x1e2   : > { %p687_p0 = pnand %p686_p8, %p682_p2 }
 0x1e4   : > { %690 = shalt.err (!%p687_p0)
}
 0x1e5   : > { %543 = dma.vmem_to_hbm [thread:$0]  (%p821_p9), %s897_s18, 128, %s408_s3, %s397_s7  }
 0x1e6 PF: > { %s422_s16 = sand.u32 1, %s729_s9   ;;  %p951_p3 = scmp.ge.s32.totalorder %s749_s14, 2 }
 0x1e7   : > { %s423_s21 = scalar_lea.sflag [#allocation5], %s422_s16 }
 0x1e8   : > { %p553_p13 = pnand %p951_p3, %p828_p11 }
 0x1ea   : > { %p554_p5 = pneg %p553_p13 }
 0x1ec   : > { %724 = dma.done.wait (%p554_p5), %s423_s21, 128  }
 0x1ed   : > { %726 = vsyncadd (%p554_p5), %s423_s21, 4294967168  ;;  %s21_s14 = sadd.s32 1, %s749_s14   ;;  %s952_s9 = smov %s733_s10 }
 0x1ee   : > { %p18_p12 = scmp.ge.s32.totalorder %s21_s14, 4   ;;  %s953_s10 = smov %s737_s11 }
 0x1ef   : > { %s954_s11 = smov %s826_s23  ;;  %s955_s12 = smov %s745_s13 }
 0x1f0   : > { %s956_s13 = smov %s958_s17  ;;  %20 = sbr.rel (!%p18_p12) target bundleno = 8 (0x8), region = 94 }
 0x1f5   :  { %428 = vsyncpa [#allocation4], 1 }
 0x1f6   :  { %430 = vsyncpa [#allocation4 + $0x1], 1 }
 0x1f7   :  { %431 = vsyncpa [#allocation7], 1 }
 0x1f8   :  { %433 = vsyncpa [#allocation7 + $0x1], 1 }
 0x1f9   :  { %434 = vsyncpa [#allocation5], 1 }
 0x1fa   :  { %436 = vsyncpa [#allocation5 + $0x1], 1 }

</bundles_post_ra>
